<compile_context>
chip_gen: v7x
topology: tpu7x:2x2x1
jax: 0.10.0
libtpu: 0.0.40
codegen_flags: <defaults>
</compile_context>

<pallas_src>
from functools import partial

import numpy as np
import jax
import jax.numpy as jnp
from jax import lax
from jax.experimental import pallas as pl
from jax.experimental.pallas import tpu as pltpu


# Whole-array-in-VMEM / SMEM specs (padded operands are tiny; no tiling grid).
_VMEM = pl.BlockSpec(memory_space=pltpu.MemorySpace.VMEM)
_SMEM = pl.BlockSpec(memory_space=pltpu.MemorySpace.SMEM)
_LANE = 128      # vreg lane width  -> pad feature dims to this
_SUBLANE = 8     # vreg sublane cnt -> pad row counts to this


def _rup(n, m):
    return ((n + m - 1) // m) * m


def _pad2(x, rows, cols):
    r, c = x.shape
    return jnp.pad(x, ((0, rows - r), (0, cols - c)))


# --------------------------------------------------------------------------
# Single fused Pallas kernel: entire MoleculeModel forward
# --------------------------------------------------------------------------
def _fused_forward_kernel(b2a_ref, b2rev_ref,                     # SMEM int32
                          f_bonds_ref, f_atoms_ref, a2b_ref, pool_ref,
                          w_i_ref, w_h_ref, w_o_a_ref, w_o_m_ref, b_o_ref,
                          ffn_w1_ref, ffn_b1_ref, ffn_w2_ref, ffn_b2_ref,
                          out_ref, mol_ref,
                          msg_ref, amsg_ref, nei_ref,
                          *, depth, n_bonds):
    f32 = jnp.float32
    bf16 = jnp.bfloat16

    # ----- MPN: input = W_i(f_bonds) (bias-free) fused with ReLU -----
    inp = jnp.dot(f_bonds_ref[...], w_i_ref[...], preferred_element_type=f32)
    msg_ref[...] = jnp.maximum(inp, 0.0)
    # Padded bond rows of `nei` are never written by the gather loop; zero the
    # scratch once so padded message rows stay exactly 0 through W_h.
    nei_ref[...] = jnp.zeros_like(nei_ref)

    a2b = a2b_ref[...]        # (na, nb) bf16 0/1 incidence (exact in bf16)
    w_h = w_h_ref[...]        # (hid, hid) bf16

    # ----- depth-1 bond message-passing steps (rolled, VMEM-resident state) -----
    @pl.loop(0, depth - 1)
    def _depth_step(_):
        # atom-wise sum of incoming bond messages (bf16 x bf16, f32 accumulate)
        amsg_ref[...] = jnp.dot(a2b, msg_ref[...].astype(bf16),
                                preferred_element_type=f32)

        # nei[b] = a_message[b2a[b]] - message[b2rev[b]]   (SMEM-indexed gathers)
        @pl.loop(0, n_bonds)
        def _gather(b):
            src = b2a_ref[b]
            rev = b2rev_ref[b]
            nei_ref[pl.ds(b, 1), :] = (amsg_ref[pl.ds(src, 1), :] -
                                       msg_ref[pl.ds(rev, 1), :])

        upd = jnp.dot(nei_ref[...].astype(bf16), w_h,
                      preferred_element_type=f32)
        msg_ref[...] = jnp.maximum(inp + upd, 0.0)

    # ----- atom readout: ReLU(W_o(concat(f_atoms, a2b @ msg)) + b_o) -----
    # concat realised by splitting W_o into its atom / message halves.
    amsg_ref[...] = jnp.dot(a2b, msg_ref[...].astype(bf16),
                            preferred_element_type=f32)
    atom_h = jnp.dot(f_atoms_ref[...], w_o_a_ref[...], preferred_element_type=f32)
    atom_h = atom_h + jnp.dot(amsg_ref[...].astype(bf16), w_o_m_ref[...],
                              preferred_element_type=f32)
    atom_h = jnp.maximum(atom_h + b_o_ref[...], 0.0)

    # ----- readout: mean over atoms of each molecule (dense pooling matmul) -----
    mol = jnp.dot(pool_ref[...], atom_h.astype(bf16), preferred_element_type=f32)
    mol_ref[...] = mol                                      # graph embeddings

    # ----- FFN (2 layers): Linear -> ReLU -> Linear, then sigmoid (eval) -----
    h = jnp.dot(mol.astype(bf16), ffn_w1_ref[...],
                preferred_element_type=f32) + ffn_b1_ref[...]
    h = jnp.maximum(h, 0.0)
    y = jnp.dot(h.astype(bf16), ffn_w2_ref[...],
                preferred_element_type=f32) + ffn_b2_ref[...]
    # sigmoid(y) = 0.5*(tanh(y/2)+1): EUP tanh, no inf for very negative y.
    out_ref[...] = 0.5 * (jnp.tanh(0.5 * y) + 1.0)


@partial(jax.jit, static_argnames=("depth",))
def molecule_model_forward(params, f_atoms, f_bonds, a2b, b2a, b2rev, pool, depth):
    """Eval-mode forward. Returns (output, graph_embeddings)."""
    n_atoms, atom_fdim = f_atoms.shape
    n_bonds, bond_fdim = f_bonds.shape
    n_mols = pool.shape[0]
    hidden = params["W_i"].shape[1]
    ffn_hidden = params["ffn_W1"].shape[1]
    out_dim = params["ffn_W2"].shape[1]

    # Padded, lane/sublane-aligned dims.
    nb = _rup(n_bonds, _SUBLANE)
    na = _rup(n_atoms, _SUBLANE)
    nm = _rup(n_mols, _SUBLANE)
    bfd = _rup(bond_fdim, _LANE)
    afd = _rup(atom_fdim, _LANE)
    hid = _rup(hidden, _LANE)
    ffh = _rup(ffn_hidden, _LANE)
    od = _rup(out_dim, _LANE)

    bf16 = jnp.bfloat16
    # Zero-pad; zeros contribute exactly 0 through every matmul.  Matmul
    # operands shipped in bf16 (f32 accumulation happens on the MXU).
    f_bonds_p = _pad2(f_bonds, nb, bfd).astype(bf16)
    f_atoms_p = _pad2(f_atoms, na, afd).astype(bf16)
    a2b_p = _pad2(a2b, na, nb).astype(bf16)         # 0/1 incidence -> exact
    pool_p = _pad2(pool, nm, na).astype(bf16)

    w_i = _pad2(params["W_i"], bfd, hid).astype(bf16)
    w_h = _pad2(params["W_h"], hid, hid).astype(bf16)
    w_o_a = _pad2(params["W_o"][:atom_fdim], afd, hid).astype(bf16)
    w_o_m = _pad2(params["W_o"][atom_fdim:], hid, hid).astype(bf16)
    b_o = _pad2(params["b_o"].reshape(1, -1), 1, hid)          # biases stay f32
    ffn_w1 = _pad2(params["ffn_W1"], hid, ffh).astype(bf16)
    ffn_b1 = _pad2(params["ffn_b1"].reshape(1, -1), 1, ffh)
    ffn_w2 = _pad2(params["ffn_W2"], ffh, od).astype(bf16)
    ffn_b2 = _pad2(params["ffn_b2"].reshape(1, -1), 1, od)

    b2a_i = b2a.astype(jnp.int32)
    b2rev_i = b2rev.astype(jnp.int32)

    out_p, mol_p = pl.pallas_call(
        partial(_fused_forward_kernel, depth=depth, n_bonds=n_bonds),
        out_shape=(jax.ShapeDtypeStruct((nm, od), jnp.float32),
                   jax.ShapeDtypeStruct((nm, hid), jnp.float32)),
        in_specs=[_SMEM, _SMEM] + [_VMEM] * 13,
        out_specs=(_VMEM, _VMEM),
        scratch_shapes=[pltpu.VMEM((nb, hid), jnp.float32),    # message
                        pltpu.VMEM((na, hid), jnp.float32),    # a_message
                        pltpu.VMEM((nb, hid), jnp.float32)],   # nei
        compiler_params=pltpu.CompilerParams(
            vmem_limit_bytes=32 * 1024 * 1024),
    )(b2a_i, b2rev_i, f_bonds_p, f_atoms_p, a2b_p, pool_p,
      w_i, w_h, w_o_a, w_o_m, b_o,
      ffn_w1, ffn_b1, ffn_w2, ffn_b2)

    # Slice the padding away in the wrapper (lane-dense stores inside the kernel).
    return out_p[:n_mols, :out_dim], mol_p[:n_mols, :hidden]


# --------------------------------------------------------------------------
# Parameters (chemprop initialize_weights: xavier_normal, zero bias)
# --------------------------------------------------------------------------
def init_params(key, atom_fdim, bond_fdim, hidden, ffn_hidden, output_size):
    ks = jax.random.split(key, 5)

    def xavier(k, shape):
        fan_in, fan_out = shape
        std = (2.0 / (fan_in + fan_out)) ** 0.5
        return std * jax.random.normal(k, shape, dtype=jnp.float32)

    return {
        "W_i": xavier(ks[0], (bond_fdim, hidden)),                 # Linear, bias=False
        "W_h": xavier(ks[1], (hidden, hidden)),                    # Linear, bias=False
        "W_o": xavier(ks[2], (atom_fdim + hidden, hidden)),
        "b_o": jnp.zeros((hidden,), jnp.float32),
        "ffn_W1": xavier(ks[3], (hidden, ffn_hidden)),
        "ffn_b1": jnp.zeros((ffn_hidden,), jnp.float32),
        "ffn_W2": xavier(ks[4], (ffn_hidden, output_size)),
        "ffn_b2": jnp.zeros((output_size,), jnp.float32),
    }


# --------------------------------------------------------------------------
# Synthetic molecular graphs (2 molecules, 8-atom rings each)
# --------------------------------------------------------------------------
def build_ring_graphs(n_mols, atoms_per_mol):
    n_atoms = n_mols * atoms_per_mol
    src, dst = [], []
    for m in range(n_mols):
        off = m * atoms_per_mol
        for a in range(atoms_per_mol):
            u, v = off + a, off + (a + 1) % atoms_per_mol
            src += [u, v]                            # directed bonds come in pairs
            dst += [v, u]
    n_bonds = len(src)

    b2a = np.asarray(src, np.int32)                  # source atom of each bond
    b2rev = (np.arange(n_bonds) ^ 1).astype(np.int32)  # reverse bond index

    a2b = np.zeros((n_atoms, n_bonds), np.float32)   # atom <- incoming bonds
    for k in range(n_bonds):
        a2b[dst[k], k] = 1.0

    pool = np.zeros((n_mols, n_atoms), np.float32)   # mean readout
    for m in range(n_mols):
        pool[m, m * atoms_per_mol:(m + 1) * atoms_per_mol] = 1.0 / atoms_per_mol

    return (jnp.asarray(a2b), jnp.asarray(b2a), jnp.asarray(b2rev),
            jnp.asarray(pool), np.asarray(src, np.int64), n_atoms, n_bonds)


# --------------------------------------------------------------------------
def _reference_forward(params, f_atoms, f_bonds, a2b, b2a, b2rev, pool, depth):
    """Pure-JAX f32 reference for correctness checking (chemprop gather form)."""
    inp = f_bonds @ params["W_i"]
    msg = jnp.maximum(inp, 0.0)
    for _ in range(depth - 1):
        a_message = a2b @ msg                       # sum of incoming messages / atom
        nei = a_message[b2a] - msg[b2rev]           # exclude the reverse bond
        msg = jnp.maximum(inp + nei @ params["W_h"], 0.0)
    a_input = jnp.concatenate([f_atoms, a2b @ msg], axis=1)
    atom_h = jnp.maximum(a_input @ params["W_o"] + params["b_o"], 0.0)
    mol = pool @ atom_h
    h = jnp.maximum(mol @ params["ffn_W1"] + params["ffn_b1"], 0.0)
    out = h @ params["ffn_W2"] + params["ffn_b2"]
    return jax.nn.sigmoid(out), mol


if __name__ == "__main__":
    # Small, chemprop-consistent hyperparameters
    n_mols, atoms_per_mol = 2, 8            # batch of 2 molecules
    atom_fdim, bond_only_fdim = 16, 8
    bond_fdim = atom_fdim + bond_only_fdim  # chemprop: concat(atom, bond) feats
    hidden, depth = 32, 3
    ffn_hidden, num_tasks = 32, 4           # output_size = num_tasks (classification)

    key = jax.random.PRNGKey(0)
    k_params, k_atoms, k_bonds = jax.random.split(key, 3)

    a2b, b2a, b2rev, pool, src, n_atoms, n_bonds = build_ring_graphs(
        n_mols, atoms_per_mol)

    f_atoms = jax.random.normal(k_atoms, (n_atoms, atom_fdim), dtype=jnp.float32)
    bond_feats = jax.random.normal(k_bonds, (n_bonds, bond_only_fdim), dtype=jnp.float32)
    f_bonds = jnp.concatenate([f_atoms[src], bond_feats], axis=1)   # [n_bonds, bond_fdim]

    params = init_params(k_params, atom_fdim, bond_fdim, hidden, ffn_hidden, num_tasks)

    out, emb = molecule_model_forward(params, f_atoms, f_bonds, a2b, b2a, b2rev,
                                      pool, depth)
    out = jax.block_until_ready(out)
    emb = jax.block_until_ready(emb)

    ref_out, ref_emb = _reference_forward(params, f_atoms, f_bonds, a2b, b2a,
                                          b2rev, pool, depth)
    assert out.shape == (n_mols, num_tasks)
    assert emb.shape == (n_mols, hidden)
    # bf16 matmul operands with f32 accumulation -> ~1e-2 relative error vs f32 ref.
    np.testing.assert_allclose(np.asarray(out), np.asarray(ref_out), rtol=3e-2, atol=3e-2)
    np.testing.assert_allclose(np.asarray(emb), np.asarray(ref_emb), rtol=3e-2, atol=3e-2)

    print("KERNEL_OK")
</pallas_src>

<mosaic_0001>
module attributes {stable_mosaic.version = 11 : i64} {
  func.func @_fused_forward_kernel(%arg0: memref<32xi32, #tpu.memory_space<smem>>, %arg1: memref<32xi32, #tpu.memory_space<smem>>, %arg2: memref<32x128xbf16, #tpu.memory_space<vmem>>, %arg3: memref<16x128xbf16, #tpu.memory_space<vmem>>, %arg4: memref<16x32xbf16, #tpu.memory_space<vmem>>, %arg5: memref<8x16xbf16, #tpu.memory_space<vmem>>, %arg6: memref<128x128xbf16, #tpu.memory_space<vmem>>, %arg7: memref<128x128xbf16, #tpu.memory_space<vmem>>, %arg8: memref<128x128xbf16, #tpu.memory_space<vmem>>, %arg9: memref<128x128xbf16, #tpu.memory_space<vmem>>, %arg10: memref<1x128xf32, #tpu.memory_space<vmem>>, %arg11: memref<128x128xbf16, #tpu.memory_space<vmem>>, %arg12: memref<1x128xf32, #tpu.memory_space<vmem>>, %arg13: memref<128x128xbf16, #tpu.memory_space<vmem>>, %arg14: memref<1x128xf32, #tpu.memory_space<vmem>>, %arg15: memref<8x128xf32, #tpu.memory_space<vmem>>, %arg16: memref<8x128xf32, #tpu.memory_space<vmem>>, %arg17: memref<32x128xf32, #tpu.memory_space<vmem>>, %arg18: memref<16x128xf32, #tpu.memory_space<vmem>>, %arg19: memref<32x128xf32, #tpu.memory_space<vmem>>) attributes {dimension_semantics = [], scalar_prefetch = 0 : i64, scratch_operands = 3 : i64, tpu.core_type = #tpu.core_type<tc>} {
    %c0 = arith.constant 0 : index
    %c0_0 = arith.constant 0 : index
    %0 = vector.load %arg2[%c0, %c0_0] : memref<32x128xbf16, #tpu.memory_space<vmem>>, vector<32x128xbf16>
    %c0_1 = arith.constant 0 : index
    %c0_2 = arith.constant 0 : index
    %1 = vector.load %arg6[%c0_1, %c0_2] : memref<128x128xbf16, #tpu.memory_space<vmem>>, vector<128x128xbf16>
    %cst = arith.constant dense<0.000000e+00> : vector<32x128xf32>
    %2 = tpu.matmul %0, %1, %cst {dimension_numbers = #tpu.dot_dimension_numbers<[1], [0], [0], [1], [0, 0, 1, 1], [], []>} : vector<32x128xbf16>, vector<128x128xbf16>, vector<32x128xf32> -> vector<32x128xf32>
    %cst_3 = arith.constant 0.000000e+00 : f32
    %3 = vector.broadcast %cst_3 : f32 to vector<32x128xf32>
    %4 = arith.maximumf %2, %3 : vector<32x128xf32>
    %c0_4 = arith.constant 0 : index
    %c0_5 = arith.constant 0 : index
    %5 = vector.load %arg17[%c0_4, %c0_5] : memref<32x128xf32, #tpu.memory_space<vmem>>, vector<32x128xf32>
    tpu.vector_store %arg17[%c0_4, %c0_5], %4 {strides = array<i32>} : memref<32x128xf32, #tpu.memory_space<vmem>>, vector<32x128xf32>,
    %cst_6 = arith.constant 0.000000e+00 : f32
    %6 = vector.broadcast %cst_6 : f32 to vector<32x128xf32>
    %c0_7 = arith.constant 0 : index
    %c0_8 = arith.constant 0 : index
    %7 = vector.load %arg19[%c0_7, %c0_8] : memref<32x128xf32, #tpu.memory_space<vmem>>, vector<32x128xf32>
    tpu.vector_store %arg19[%c0_7, %c0_8], %6 {strides = array<i32>} : memref<32x128xf32, #tpu.memory_space<vmem>>, vector<32x128xf32>,
    %c0_9 = arith.constant 0 : index
    %c0_10 = arith.constant 0 : index
    %8 = vector.load %arg4[%c0_9, %c0_10] : memref<16x32xbf16, #tpu.memory_space<vmem>>, vector<16x32xbf16>
    %c0_11 = arith.constant 0 : index
    %c0_12 = arith.constant 0 : index
    %9 = vector.load %arg7[%c0_11, %c0_12] : memref<128x128xbf16, #tpu.memory_space<vmem>>, vector<128x128xbf16>
    %c0_i32 = arith.constant 0 : i32
    %c2_i32 = arith.constant 2 : i32
    %10 = arith.addi %c0_i32, %c2_i32 : i32
    %c1_i32 = arith.constant 1 : i32
    scf.for %arg20 = %c0_i32 to %10 step %c1_i32  : i32 {
      %c0_52 = arith.constant 0 : index
      %c0_53 = arith.constant 0 : index
      %54 = vector.load %arg17[%c0_52, %c0_53] : memref<32x128xf32, #tpu.memory_space<vmem>>, vector<32x128xf32>
      %55 = arith.truncf %54 : vector<32x128xf32> to vector<32x128xbf16>
      %cst_54 = arith.constant dense<0.000000e+00> : vector<16x128xf32>
      %56 = tpu.matmul %8, %55, %cst_54 {dimension_numbers = #tpu.dot_dimension_numbers<[1], [0], [0], [1], [0, 0, 1, 1], [], []>} : vector<16x32xbf16>, vector<32x128xbf16>, vector<16x128xf32> -> vector<16x128xf32>
      %c0_55 = arith.constant 0 : index
      %c0_56 = arith.constant 0 : index
      %57 = vector.load %arg18[%c0_55, %c0_56] : memref<16x128xf32, #tpu.memory_space<vmem>>, vector<16x128xf32>
      tpu.vector_store %arg18[%c0_55, %c0_56], %56 {strides = array<i32>} : memref<16x128xf32, #tpu.memory_space<vmem>>, vector<16x128xf32>,
      %c0_i32_57 = arith.constant 0 : i32
      %c32_i32 = arith.constant 32 : i32
      %58 = arith.addi %c0_i32_57, %c32_i32 : i32
      %c1_i32_58 = arith.constant 1 : i32
      scf.for %arg21 = %c0_i32_57 to %58 step %c1_i32_58  : i32 {
        %c1_i32_66 = arith.constant 1 : i32
        %66 = arith.muli %arg21, %c1_i32_66 : i32
        %c0_i32_67 = arith.constant 0 : i32
        %67 = arith.addi %c0_i32_67, %66 : i32
        %68 = arith.index_cast %67 : i32 to index
        %69 = memref.load %arg0[%68] : memref<32xi32, #tpu.memory_space<smem>>
        %70 = arith.index_cast %67 : i32 to index
        %71 = memref.load %arg1[%70] : memref<32xi32, #tpu.memory_space<smem>>
        %72 = arith.index_cast %69 : i32 to index
        %c0_68 = arith.constant 0 : index
        %73 = vector.load %arg18[%72, %c0_68] : memref<16x128xf32, #tpu.memory_space<vmem>>, vector<1x128xf32>
        %74 = arith.index_cast %71 : i32 to index
        %c0_69 = arith.constant 0 : index
        %75 = vector.load %arg17[%74, %c0_69] : memref<32x128xf32, #tpu.memory_space<vmem>>, vector<1x128xf32>
        %76 = arith.subf %73, %75 : vector<1x128xf32>
        %77 = arith.index_cast %67 : i32 to index
        %c0_70 = arith.constant 0 : index
        %78 = vector.load %arg19[%77, %c0_70] : memref<32x128xf32, #tpu.memory_space<vmem>>, vector<1x128xf32>
        tpu.vector_store %arg19[%77, %c0_70], %76 {strides = array<i32>} : memref<32x128xf32, #tpu.memory_space<vmem>>, vector<1x128xf32>,
      }
      %c32_i32_59 = arith.constant 32 : i32
      %c0_60 = arith.constant 0 : index
      %c0_61 = arith.constant 0 : index
      %59 = vector.load %arg19[%c0_60, %c0_61] : memref<32x128xf32, #tpu.memory_space<vmem>>, vector<32x128xf32>
      %60 = arith.truncf %59 : vector<32x128xf32> to vector<32x128xbf16>
      %cst_62 = arith.constant dense<0.000000e+00> : vector<32x128xf32>
      %61 = tpu.matmul %60, %9, %cst_62 {dimension_numbers = #tpu.dot_dimension_numbers<[1], [0], [0], [1], [0, 0, 1, 1], [], []>} : vector<32x128xbf16>, vector<128x128xbf16>, vector<32x128xf32> -> vector<32x128xf32>
      %62 = arith.addf %2, %61 : vector<32x128xf32>
      %cst_63 = arith.constant 0.000000e+00 : f32
      %63 = vector.broadcast %cst_63 : f32 to vector<32x128xf32>
      %64 = arith.maximumf %62, %63 : vector<32x128xf32>
      %c0_64 = arith.constant 0 : index
      %c0_65 = arith.constant 0 : index
      %65 = vector.load %arg17[%c0_64, %c0_65] : memref<32x128xf32, #tpu.memory_space<vmem>>, vector<32x128xf32>
      tpu.vector_store %arg17[%c0_64, %c0_65], %64 {strides = array<i32>} : memref<32x128xf32, #tpu.memory_space<vmem>>, vector<32x128xf32>,
    }
    %c0_13 = arith.constant 0 : index
    %c0_14 = arith.constant 0 : index
    %11 = vector.load %arg17[%c0_13, %c0_14] : memref<32x128xf32, #tpu.memory_space<vmem>>, vector<32x128xf32>
    %12 = arith.truncf %11 : vector<32x128xf32> to vector<32x128xbf16>
    %cst_15 = arith.constant dense<0.000000e+00> : vector<16x128xf32>
    %13 = tpu.matmul %8, %12, %cst_15 {dimension_numbers = #tpu.dot_dimension_numbers<[1], [0], [0], [1], [0, 0, 1, 1], [], []>} : vector<16x32xbf16>, vector<32x128xbf16>, vector<16x128xf32> -> vector<16x128xf32>
    %c0_16 = arith.constant 0 : index
    %c0_17 = arith.constant 0 : index
    %14 = vector.load %arg18[%c0_16, %c0_17] : memref<16x128xf32, #tpu.memory_space<vmem>>, vector<16x128xf32>
    tpu.vector_store %arg18[%c0_16, %c0_17], %13 {strides = array<i32>} : memref<16x128xf32, #tpu.memory_space<vmem>>, vector<16x128xf32>,
    %c0_18 = arith.constant 0 : index
    %c0_19 = arith.constant 0 : index
    %15 = vector.load %arg3[%c0_18, %c0_19] : memref<16x128xbf16, #tpu.memory_space<vmem>>, vector<16x128xbf16>
    %c0_20 = arith.constant 0 : index
    %c0_21 = arith.constant 0 : index
    %16 = vector.load %arg8[%c0_20, %c0_21] : memref<128x128xbf16, #tpu.memory_space<vmem>>, vector<128x128xbf16>
    %cst_22 = arith.constant dense<0.000000e+00> : vector<16x128xf32>
    %17 = tpu.matmul %15, %16, %cst_22 {dimension_numbers = #tpu.dot_dimension_numbers<[1], [0], [0], [1], [0, 0, 1, 1], [], []>} : vector<16x128xbf16>, vector<128x128xbf16>, vector<16x128xf32> -> vector<16x128xf32>
    %c0_23 = arith.constant 0 : index
    %c0_24 = arith.constant 0 : index
    %18 = vector.load %arg18[%c0_23, %c0_24] : memref<16x128xf32, #tpu.memory_space<vmem>>, vector<16x128xf32>
    %19 = arith.truncf %18 : vector<16x128xf32> to vector<16x128xbf16>
    %c0_25 = arith.constant 0 : index
    %c0_26 = arith.constant 0 : index
    %20 = vector.load %arg9[%c0_25, %c0_26] : memref<128x128xbf16, #tpu.memory_space<vmem>>, vector<128x128xbf16>
    %cst_27 = arith.constant dense<0.000000e+00> : vector<16x128xf32>
    %21 = tpu.matmul %19, %20, %cst_27 {dimension_numbers = #tpu.dot_dimension_numbers<[1], [0], [0], [1], [0, 0, 1, 1], [], []>} : vector<16x128xbf16>, vector<128x128xbf16>, vector<16x128xf32> -> vector<16x128xf32>
    %22 = arith.addf %17, %21 : vector<16x128xf32>
    %c0_28 = arith.constant 0 : index
    %c0_29 = arith.constant 0 : index
    %23 = vector.load %arg10[%c0_28, %c0_29] : memref<1x128xf32, #tpu.memory_space<vmem>>, vector<1x128xf32>
    %24 = vector.broadcast %23 : vector<1x128xf32> to vector<16x128xf32>
    %25 = arith.addf %22, %24 : vector<16x128xf32>
    %cst_30 = arith.constant 0.000000e+00 : f32
    %26 = vector.broadcast %cst_30 : f32 to vector<16x128xf32>
    %27 = arith.maximumf %25, %26 : vector<16x128xf32>
    %c0_31 = arith.constant 0 : index
    %c0_32 = arith.constant 0 : index
    %28 = vector.load %arg5[%c0_31, %c0_32] : memref<8x16xbf16, #tpu.memory_space<vmem>>, vector<8x16xbf16>
    %29 = arith.truncf %27 : vector<16x128xf32> to vector<16x128xbf16>
    %cst_33 = arith.constant dense<0.000000e+00> : vector<8x128xf32>
    %30 = tpu.matmul %28, %29, %cst_33 {dimension_numbers = #tpu.dot_dimension_numbers<[1], [0], [0], [1], [0, 0, 1, 1], [], []>} : vector<8x16xbf16>, vector<16x128xbf16>, vector<8x128xf32> -> vector<8x128xf32>
    %c0_34 = arith.constant 0 : index
    %c0_35 = arith.constant 0 : index
    %31 = vector.load %arg16[%c0_34, %c0_35] : memref<8x128xf32, #tpu.memory_space<vmem>>, vector<8x128xf32>
    tpu.vector_store %arg16[%c0_34, %c0_35], %30 {strides = array<i32>} : memref<8x128xf32, #tpu.memory_space<vmem>>, vector<8x128xf32>,
    %32 = arith.truncf %30 : vector<8x128xf32> to vector<8x128xbf16>
    %c0_36 = arith.constant 0 : index
    %c0_37 = arith.constant 0 : index
    %33 = vector.load %arg11[%c0_36, %c0_37] : memref<128x128xbf16, #tpu.memory_space<vmem>>, vector<128x128xbf16>
    %cst_38 = arith.constant dense<0.000000e+00> : vector<8x128xf32>
    %34 = tpu.matmul %32, %33, %cst_38 {dimension_numbers = #tpu.dot_dimension_numbers<[1], [0], [0], [1], [0, 0, 1, 1], [], []>} : vector<8x128xbf16>, vector<128x128xbf16>, vector<8x128xf32> -> vector<8x128xf32>
    %c0_39 = arith.constant 0 : index
    %c0_40 = arith.constant 0 : index
    %35 = vector.load %arg12[%c0_39, %c0_40] : memref<1x128xf32, #tpu.memory_space<vmem>>, vector<1x128xf32>
    %36 = vector.broadcast %35 : vector<1x128xf32> to vector<8x128xf32>
    %37 = arith.addf %34, %36 : vector<8x128xf32>
    %cst_41 = arith.constant 0.000000e+00 : f32
    %38 = vector.broadcast %cst_41 : f32 to vector<8x128xf32>
    %39 = arith.maximumf %37, %38 : vector<8x128xf32>
    %40 = arith.truncf %39 : vector<8x128xf32> to vector<8x128xbf16>
    %c0_42 = arith.constant 0 : index
    %c0_43 = arith.constant 0 : index
    %41 = vector.load %arg13[%c0_42, %c0_43] : memref<128x128xbf16, #tpu.memory_space<vmem>>, vector<128x128xbf16>
    %cst_44 = arith.constant dense<0.000000e+00> : vector<8x128xf32>
    %42 = tpu.matmul %40, %41, %cst_44 {dimension_numbers = #tpu.dot_dimension_numbers<[1], [0], [0], [1], [0, 0, 1, 1], [], []>} : vector<8x128xbf16>, vector<128x128xbf16>, vector<8x128xf32> -> vector<8x128xf32>
    %c0_45 = arith.constant 0 : index
    %c0_46 = arith.constant 0 : index
    %43 = vector.load %arg14[%c0_45, %c0_46] : memref<1x128xf32, #tpu.memory_space<vmem>>, vector<1x128xf32>
    %44 = vector.broadcast %43 : vector<1x128xf32> to vector<8x128xf32>
    %45 = arith.addf %42, %44 : vector<8x128xf32>
    %cst_47 = arith.constant 5.000000e-01 : f32
    %46 = vector.broadcast %cst_47 : f32 to vector<8x128xf32>
    %47 = arith.mulf %46, %45 : vector<8x128xf32>
    %48 = math.tanh %47 : vector<8x128xf32>
    %cst_48 = arith.constant 1.000000e+00 : f32
    %49 = vector.broadcast %cst_48 : f32 to vector<8x128xf32>
    %50 = arith.addf %48, %49 : vector<8x128xf32>
    %cst_49 = arith.constant 5.000000e-01 : f32
    %51 = vector.broadcast %cst_49 : f32 to vector<8x128xf32>
    %52 = arith.mulf %51, %50 : vector<8x128xf32>
    %c0_50 = arith.constant 0 : index
    %c0_51 = arith.constant 0 : index
    %53 = vector.load %arg15[%c0_50, %c0_51] : memref<8x128xf32, #tpu.memory_space<vmem>>, vector<8x128xf32>
    tpu.vector_store %arg15[%c0_50, %c0_51], %52 {strides = array<i32>} : memref<8x128xf32, #tpu.memory_space<vmem>>, vector<8x128xf32>,
    return
  }
}

</mosaic_0001>

<bundles_post_ra>
// kernel: molecule_model_forward.1
= control target key start
LH: loop header
LB: loop body
LE: loop exit
PB: predicated region body
PF: predicated region fallthrough
CT: control target
= control target key end

     0   :  { %s1830_s0 = inlined_call_operand.vmem [shape: s32[32], index: 0, kind: input, shape index: {}]   ;;  %s1831_s1 = inlined_call_operand.vmem [shape: s32[32], index: 1, kind: input, shape index: {}]   ;;  %s1832_s2 = inlined_call_operand.vmem [shape: bf16[32,128], index: 2, kind: input, shape index: {}]   ;;  %s1833_s3 = inlined_call_operand.vmem [shape: bf16[16,128], index: 3, kind: input, shape index: {}]   ;;  %s1834_s4 = inlined_call_operand.vmem [shape: bf16[16,32], index: 4, kind: input, shape index: {}]   ;;  %s1835_s5 = inlined_call_operand.vmem [shape: bf16[8,16], index: 5, kind: input, shape index: {}]   ;;  %s1836_s6 = inlined_call_operand.vmem [shape: bf16[128,128], index: 6, kind: input, shape index: {}]   ;;  %s1837_s7 = inlined_call_operand.vmem [shape: bf16[128,128], index: 7, kind: input, shape index: {}]   ;;  %s1838_s8 = inlined_call_operand.vmem [shape: bf16[128,128], index: 8, kind: input, shape index: {}]   ;;  %s1839_s9 = inlined_call_operand.vmem [shape: bf16[128,128], index: 9, kind: input, shape index: {}]   ;;  %s1840_s10 = inlined_call_operand.vmem [shape: f32[1,128], index: 10, kind: input, shape index: {}]   ;;  %s1841_s11 = inlined_call_operand.vmem [shape: bf16[128,128], index: 11, kind: input, shape index: {}]   ;;  %s1842_s12 = inlined_call_operand.vmem [shape: f32[1,128], index: 12, kind: input, shape index: {}]   ;;  %s1843_s13 = inlined_call_operand.vmem [shape: bf16[128,128], index: 13, kind: input, shape index: {}]   ;;  %s1844_s14 = inlined_call_operand.vmem [shape: f32[1,128], index: 14, kind: input, shape index: {}]   ;;  %s1845_s15 = inlined_call_operand.vmem [shape: f32[8,128], index: 15, kind: output, shape index: {0}]   ;;  %s1846_s16 = inlined_call_operand.vmem [shape: f32[8,128], index: 16, kind: output, shape index: {1}]  }
   0x1   :  { %1847 = sst [smem:[#allocation11_spill]] %s1830_s0 }
   0x2   :  { %22 = vsyncpa [#allocation6], 0  ;;  %s1848_s23 = sld [smem:[#allocation11_spill]] }
   0x8   :  { %s30_s24 = sshll.u32 %s1848_s23, 4  ;;  %s31_s24 = int_to_ptr.vmem [resolvable:$true] %s30_s24 }
   0x9   :  { %23 = vsyncpa [#allocation8], 0  ;;  %s40_s27 = sshll.u32 %s1831_s1, 4  ;;  %s1353_s28 = scalar_lea.vmem %s31_s24, 16  ;;  %s41_s27 = int_to_ptr.vmem [resolvable:$true] %s40_s27 }
   0xa   :  { %p1354_p0 = scmp.ne.s32.totalorder %s31_s24, %s1353_s28  ;;  %p1358_p1 = scmp.lt.s32.totalorder %s31_s24, %s31_s24 }
   0xb   :  { %p1359_p2 = scmp.lt.s32.totalorder %s1353_s28, %s1353_s28 }
   0xd   :  { %p1360_p3 = por %p1359_p2, %p1358_p1 }
   0xf   :  { %p1361_p4 = pnand %p1360_p3, %p1354_p0 }
  0x11   :  { %1364 = shalt.err (!%p1361_p4)
}
  0x12   :  { %s1397_s29 = smov [#allocation5]   ;;  %s1365_s30 = scalar_lea.vmem %s41_s27, 16 }
  0x13   :  { %33 = dma.vmem_to_smem %s31_s24, 16, %s1397_s29, [#allocation6]  }
  0x14   :  { %p1366_p5 = scmp.ne.s32.totalorder %s41_s27, %s1365_s30  ;;  %p1370_p6 = scmp.lt.s32.totalorder %s41_s27, %s41_s27 }
  0x15   :  { %p1371_p7 = scmp.lt.s32.totalorder %s1365_s30, %s1365_s30 }
  0x17   :  { %p1372_p8 = por %p1371_p7, %p1370_p6 }
  0x19   :  { %p1373_p9 = pnand %p1372_p8, %p1366_p5 }
  0x1b   :  { %1376 = shalt.err (!%p1373_p9)
}
  0x1c   :  { %s1398_s0 = smov [#allocation7]  }
  0x1d   :  { %43 = dma.vmem_to_smem %s41_s27, 16, %s1398_s0, [#allocation8]  }
  0x1e   :  { %1385 = dma.done.wait [#allocation6], 16  }
  0x1f   :  { %1386 = vsyncadd [#allocation6], 4294967280 }
  0x20   :  { %1387 = dma.done.wait [#allocation8], 16  }
  0x21   :  { %1388 = vsyncadd [#allocation8], 4294967280 }
  0x22   :  { %76 = sfence }
  0x23   :  { %v1308_v0 = vld [vmem:[%s1836_s6] sm:$0xff]   ;;  %v1309_v1 = vld [vmem:[%s1836_s6 + $0x8] sm:$0xff]   ;;  %v1310_v2 = vld [vmem:[%s1836_s6 + $0x10] sm:$0xff]   ;;  %v1399_v10 = vmov 0.0  }
  0x24   :  { %1144 = vmatprep.subr.bf16.mxu0 %v1308_v0  ;;  %v1311_v3 = vld [vmem:[%s1836_s6 + $0x18] sm:$0xff]   ;;  %v1316_v4 = vld [vmem:[%s1832_s2] sm:$0xff]   ;;  %v1313_v6 = vld [vmem:[%s1836_s6 + $0x28] sm:$0xff]   ;;  %215 = vst [vmem:[#allocation4] sm:$0xff] %v1399_v10 }
  0x25   :  { %1145 = vmatpush3.bf16.msra.mxu0 %v1308_v0  ;;  %1160 = vmatprep.mubr.bf16.mxu0 %v1316_v4  ;;  %v1312_v5 = vld [vmem:[%s1836_s6 + $0x20] sm:$0xff]   ;;  %v1314_v7 = vld [vmem:[%s1836_s6 + $0x30] sm:$0xff]   ;;  %v1315_v8 = vld [vmem:[%s1836_s6 + $0x38] sm:$0xff]   ;;  %216 = vst [vmem:[#allocation4 + $0x8] sm:$0xff] %v1399_v10 }
  0x26   :  { %1146 = vmatprep.subr.bf16.mxu0 %v1309_v1  ;;  %v1317_v9 = vld [vmem:[%s1832_s2 + $0x8] sm:$0xff]   ;;  %217 = vst [vmem:[#allocation4 + $0x10] sm:$0xff] %v1399_v10  ;;  %218 = vst [vmem:[#allocation4 + $0x18] sm:$0xff] %v1399_v10  ;;  %v1531_v11 = vld [vmem:[%s1834_s4] sm:$0xf] }
  0x27   :  { %v1536_v12 = vld [vmem:[%s1834_s4 + $0x4] sm:$0xf]  ;;  %v1541_v13 = vld [vmem:[%s1837_s7] sm:$0xf]  ;;  %v1551_v15 = vld [vmem:[%s1837_s7 + $0x8] sm:$0xf] }
  0x28   :  { %v1546_v14 = vld [vmem:[%s1837_s7 + $0x4] sm:$0xf]  ;;  %v1556_v16 = vld [vmem:[%s1837_s7 + $0xc] sm:$0xf]  ;;  %v1561_v17 = vld [vmem:[%s1837_s7 + $0x10] sm:$0xf] }
  0x29   :  { %1147 = vmatpush3.bf16.msra.mxu0 %v1309_v1  ;;  %v1566_v18 = vld [vmem:[%s1837_s7 + $0x14] sm:$0xf]  ;;  %v1571_v19 = vld [vmem:[%s1837_s7 + $0x18] sm:$0xf]  ;;  %v1576_v20 = vld [vmem:[%s1837_s7 + $0x1c] sm:$0xf] }
  0x2a   :  { %1148 = vmatprep.subr.bf16.mxu0 %v1310_v2  ;;  %v1581_v21 = vld [vmem:[%s1837_s7 + $0x20] sm:$0xf]  ;;  %v1586_v22 = vld [vmem:[%s1837_s7 + $0x24] sm:$0xf]  ;;  %v1591_v23 = vld [vmem:[%s1837_s7 + $0x28] sm:$0xf] }
  0x2b   :  { %v1596_v24 = vld [vmem:[%s1837_s7 + $0x2c] sm:$0xf]  ;;  %v1601_v25 = vld [vmem:[%s1837_s7 + $0x30] sm:$0xf]  ;;  %v1606_v26 = vld [vmem:[%s1837_s7 + $0x34] sm:$0xf] }
  0x2c   :  { %v1611_v27 = vld [vmem:[%s1837_s7 + $0x38] sm:$0xf]  ;;  %v1616_v28 = vld [vmem:[%s1837_s7 + $0x3c] sm:$0xf]  ;;  %s1630_s7 = smov 0  }
  0x2d   :  { %1149 = vmatpush3.bf16.msra.mxu0 %v1310_v2 }
  0x2e   :  { %1150 = vmatprep.subr.bf16.mxu0 %v1311_v3 }
  0x31   :  { %1151 = vmatpush3.bf16.msra.mxu0 %v1311_v3 }
  0x32   :  { %1152 = vmatprep.subr.bf16.mxu0 %v1312_v5 }
  0x35   :  { %1153 = vmatpush3.bf16.msra.mxu0 %v1312_v5 }
  0x36   :  { %1154 = vmatprep.subr.bf16.mxu0 %v1313_v6 }
  0x39   :  { %1155 = vmatpush3.bf16.msra.mxu0 %v1313_v6 }
  0x3a   :  { %1156 = vmatprep.subr.bf16.mxu0 %v1314_v7 }
  0x3d   :  { %1157 = vmatpush3.bf16.msra.mxu0 %v1314_v7 }
  0x3e   :  { %1158 = vmatprep.subr.bf16.mxu0 %v1315_v8 }
  0x41   :  { %1159 = vmatpush3.bf16.msra.mxu0 %v1315_v8 }
  0x44   :  { %1161 = vmatmul.mubr.bf16.vlgmr.msra.gmra.mrb[0].mxu0 %v1317_v9 }
 0x117   :  { %v1618_v29 = vpop.f32.mrb[0].mxu0 }
 0x118   :  { %v209_v30 = vmax.f32 %v1618_v29, 0.0  ;;  %v1621_v31 = vpop.f32.mrb[1].mxu0 }
 0x119   :  { %v207_v32 = vmax.f32 %v1621_v31, 0.0  ;;  %v1624_v33 = vpop.f32.mrb[2].mxu0 }
 0x11a   :  { %213 = vst [vmem:[#allocation2 + $0x10] sm:$0xff] %v209_v30  ;;  %v210_v34 = vmax.f32 %v1624_v33, 0.0  ;;  %v1627_v35 = vpop.f32.mrb[3].mxu0 }
 0x11b   :  { %211 = vst [vmem:[#allocation2] sm:$0xff] %v207_v32  ;;  %v208_v36 = vmax.f32 %v1627_v35, 0.0 }
 0x11c   :  { %214 = vst [vmem:[#allocation2 + $0x18] sm:$0xff] %v210_v34 }
 0x11d   :  { %212 = vst [vmem:[#allocation2 + $0x8] sm:$0xff] %v208_v36 }
 0x11e LB: > { %v1400_v40 = vmov 0.0   ;;  %vm1401_vm0 = vmmov 0   ;;  %v1637_v44 = vcombine.low %v1531_v11, %v1536_v12  ;;  %vm254_vm1 = vcmask 261120   ;;  %s1393_s18 = smov 0   ;;  %s1391_s7 = sphi %s1630_s7, %s242_s7  }
 0x11f   : > { %1164 = vmatprep.subr.bf16.mxu0 %v1400_v40  ;;  %1168 = vmatprep.mubr.msk.bf16.mxu0 %vm1401_vm0, %v1400_v40 }
 0x121   : > { %v245_v39 = vld [vmem:[#allocation2 + $0x10] sm:$0xff] }
 0x122   : > { %v243_v37 = vld [vmem:[#allocation2] sm:$0xff] }
 0x123   : > { %v246_v42 = vld [vmem:[#allocation2 + $0x18] sm:$0xff] }
 0x124   : > { %v244_v38 = vld [vmem:[#allocation2 + $0x8] sm:$0xff]  ;;  %v248_v43 = vpack.c.bf16 %v246_v42, %v245_v39 }
 0x125   : > { %v247_v41 = vpack.c.bf16 %v244_v38, %v243_v37 }
 0x127   : > { %1165 = vmatpush3.bf16.msra.mxu0 %v247_v41 }
 0x128   : > { %1166 = vmatprep.subr.bf16.mxu0 %v1400_v40 }
 0x12b   : > { %1167 = vmatpush3.bf16.msra.mxu0 %v248_v43 }
 0x12e   : > { %1169 = vmatmul.mubr.msk.bf16.vlgmr.msra.gmra.mrb[0].mxu0 %vm254_vm1, %v1637_v44 }
 0x201   : > { %v292_v45 = vpop.f32.mrb[0].mxu0 }
 0x202   : > { %299 = vst [vmem:[#allocation3] sm:$0xff] %v292_v45  ;;  %v1170_v46 = vpop.f32.mrb[1].mxu0 }
 0x203   : > { %v295_v47 = vpop.f32.mrb[2].mxu0 }
 0x204   : > { %300 = vst [vmem:[#allocation3 + $0x8] sm:$0xff] %v295_v47  ;;  %v1171_v48 = vpop.f32.mrb[3].mxu0 }
 0x205 LB: >> { %s307_s19 = sld [smem:[#allocation5 + %s1395_s18]]  ;;  %s314_s22 = scalar_lea.vmem [#allocation4], %s1395_s18  ;;  %s1395_s18 = sphi %s1393_s18, %s306_s18  }
 0x206   : >> { %s308_s20 = sld [smem:[#allocation7 + %s1395_s18]]  ;;  %s306_s18 = sadd.s32 1, %s1395_s18  }
 0x207   : >> { %p303_p10 = scmp.ge.s32.totalorder %s306_s18, 32  }
 0x208   : > { %v1033_v52 = vcombine.low (%p303_p10), %v1541_v13, %v1546_v14  ;;  %v1034_v53 = vcombine.low (%p303_p10), %v1551_v15, %v1556_v16  ;;  %v1035_v57 = vcombine.low (%p303_p10), %v1561_v17, %v1566_v18  ;;  %v1036_v58 = vcombine.low (%p303_p10), %v1571_v19, %v1576_v20  ;;  %s242_s7 = sadd.s32 (%p303_p10), 1, %s1391_s7  }
 0x209   : > { %v1037_v59 = vcombine.low (%p303_p10), %v1581_v21, %v1586_v22  ;;  %v1038_v60 = vcombine.low (%p303_p10), %v1591_v23, %v1596_v24  ;;  %v1039_v61 = vcombine.low (%p303_p10), %v1601_v25, %v1606_v26  ;;  %v1040_v62 = vcombine.low (%p303_p10), %v1611_v27, %v1616_v28  ;;  %p239_p11 = scmp.ge.s32.totalorder (%p303_p10), %s242_s7, 2  }
 0x20a   : > { %305 = sbr.rel (!%p303_p10) target bundleno = 517 (0x205), region = 113  ;;  %1172 = vmatprep.subr.bf16.mxu1 (%p303_p10), %v1033_v52 }
 0x20b   : >> { %s309_s21 = scalar_lea.vmem [#allocation3], %s307_s19  ;;  %1173 = vmatpush3.bf16.msra.mxu1 (%p303_p10), %v1033_v52 }
 0x20c   : >> { %v310_v49 = vld [vmem:[%s309_s21] sm:$0x1]  ;;  %s311_s6 = scalar_lea.vmem [#allocation2], %s308_s20  ;;  %1174 = vmatprep.subr.bf16.mxu1 (%p303_p10), %v1034_v53 }
 0x20d   : >> { %v312_v50 = vld [vmem:[%s311_s6] sm:$0x1] }
 0x20e   : >> { %v313_v51 = vsub.f32 %v310_v49, %v312_v50 }
 0x20f   : > { %1175 = vmatpush3.bf16.msra.mxu1 (%p303_p10), %v1034_v53 }
 0x210   : >> { %315 = vst [vmem:[%s314_s22] sm:$0x1] %v313_v51  ;;  %1176 = vmatprep.subr.bf16.mxu1 (%p303_p10), %v1035_v57 }
 0x211   :  { %1192 = vmatprep.subr.bf16.mxu0 (%p239_p11), %v1399_v10  ;;  %vm1402_vm2 = vmmov (%p239_p11), 0   ;;  %v1319_v11 = vld [vmem:[%s1839_s9] sm:$0xff] (%p239_p11)   ;;  %v1321_v12 = vld [vmem:[%s1839_s9 + $0x8] sm:$0xff] (%p239_p11)   ;;  %v1323_v14 = vld [vmem:[%s1839_s9 + $0x10] sm:$0xff] (%p239_p11)   ;;  %vm723_vm3 = vcmask (%p239_p11), 130048  }
 0x212   :  { %1196 = vmatprep.mubr.msk.bf16.mxu0 (%p239_p11), %vm1402_vm2, %v1399_v10  ;;  %v1318_v13 = vld [vmem:[%s1838_s8] sm:$0xff] (%p239_p11)   ;;  %v1320_v15 = vld [vmem:[%s1838_s8 + $0x8] sm:$0xff] (%p239_p11)   ;;  %v1325_v16 = vld [vmem:[%s1839_s9 + $0x18] sm:$0xff] (%p239_p11)  }
 0x213   : > { %1177 = vmatpush3.bf16.msra.mxu1 %v1035_v57  ;;  %v1322_v17 = vld [vmem:[%s1838_s8 + $0x10] sm:$0xff] (%p239_p11)   ;;  %v1327_v18 = vld [vmem:[%s1839_s9 + $0x20] sm:$0xff] (%p239_p11)   ;;  %v1324_v19 = vld [vmem:[%s1838_s8 + $0x18] sm:$0xff] (%p239_p11)  }
 0x214   : > { %1178 = vmatprep.subr.bf16.mxu1 %v1036_v58  ;;  %v1326_v20 = vld [vmem:[%s1838_s8 + $0x20] sm:$0xff] (%p239_p11)   ;;  %v1328_v21 = vld [vmem:[%s1838_s8 + $0x28] sm:$0xff] (%p239_p11)   ;;  %v1330_v23 = vld [vmem:[%s1838_s8 + $0x30] sm:$0xff] (%p239_p11)  }
 0x215   :  { %v1329_v22 = vld [vmem:[%s1839_s9 + $0x28] sm:$0xff] (%p239_p11)   ;;  %v1331_v24 = vld [vmem:[%s1839_s9 + $0x30] sm:$0xff] (%p239_p11)   ;;  %v1332_v25 = vld [vmem:[%s1838_s8 + $0x38] sm:$0xff] (%p239_p11)  }
 0x216   :  { %v1333_v26 = vld [vmem:[%s1839_s9 + $0x38] sm:$0xff] (%p239_p11)   ;;  %v1334_v27 = vld [vmem:[%s1833_s3] sm:$0xff] (%p239_p11)   ;;  %v1336_v48 = vld [vmem:[%s1841_s11 + $0x8] sm:$0xff] (%p239_p11)  }
 0x217   : > { %v316_v54 = vld [vmem:[#allocation4] sm:$0xff]  ;;  %v317_v55 = vld [vmem:[#allocation4 + $0x8] sm:$0xff]  ;;  %1179 = vmatpush3.bf16.msra.mxu1 %v1036_v58  ;;  %v318_v63 = vld [vmem:[#allocation4 + $0x10] sm:$0xff] }
 0x218   : > { %v320_v56 = vpack.c.bf16 %v317_v55, %v316_v54  ;;  %1180 = vmatprep.subr.bf16.mxu1 %v1037_v59  ;;  %v319_v0 = vld [vmem:[#allocation4 + $0x18] sm:$0xff]  ;;  %v1335_v47 = vld [vmem:[%s1841_s11] sm:$0xff] (%p239_p11)   ;;  %v1337_v49 = vld [vmem:[%s1841_s11 + $0x10] sm:$0xff] (%p239_p11)  }
 0x219   : > { %v321_v1 = vpack.c.bf16 %v319_v0, %v318_v63  ;;  %v1338_v50 = vld [vmem:[%s1841_s11 + $0x18] sm:$0xff] (%p239_p11)   ;;  %v1339_v51 = vld [vmem:[%s1841_s11 + $0x20] sm:$0xff] (%p239_p11)   ;;  %v1340_v52 = vld [vmem:[%s1841_s11 + $0x28] sm:$0xff] (%p239_p11)  }
 0x21a   : > { %1188 = vmatprep.mubr.bf16.mxu1 %v320_v56  ;;  %v1341_v53 = vld [vmem:[%s1841_s11 + $0x30] sm:$0xff] (%p239_p11)   ;;  %v1060_v55 = vld [vmem:[%s1840_s10] ss:$0 sm:$0xff] (%p239_p11) }
 0x21b   : > { %1181 = vmatpush3.bf16.msra.mxu1 %v1037_v59 }
 0x21c   : > { %1182 = vmatprep.subr.bf16.mxu1 %v1038_v60 }
 0x21f   : > { %1183 = vmatpush3.bf16.msra.mxu1 %v1038_v60 }
 0x220   : > { %1184 = vmatprep.subr.bf16.mxu1 %v1039_v61 }
 0x223   : > { %1185 = vmatpush3.bf16.msra.mxu1 %v1039_v61 }
 0x224   : > { %1186 = vmatprep.subr.bf16.mxu1 %v1040_v62 }
 0x227   : > { %1187 = vmatpush3.bf16.msra.mxu1 %v1040_v62 }
 0x228   :  { %1200 = vmatprep.subr.bf16.mxu1 (%p239_p11), %v1399_v10 }
 0x22a   : > { %1189 = vmatmul.mubr.bf16.vlgmr.msra.gmra.mrb[0].mxu1 %v321_v1 }
 0x22b   :  { %1216 = vmatprep.mubr.msk.bf16.mxu1 (%p239_p11), %vm1402_vm2, %v1399_v10  ;;  %1201 = vmatpush3.bf16.msra.mxu1 (%p239_p11), %v1319_v11 }
 0x22c   :  { %1202 = vmatprep.subr.bf16.mxu1 (%p239_p11), %v1399_v10 }
 0x22f   :  { %1203 = vmatpush3.bf16.msra.mxu1 (%p239_p11), %v1321_v12 }
 0x230   :  { %1204 = vmatprep.subr.bf16.mxu1 (%p239_p11), %v1399_v10 }
 0x233   :  { %1205 = vmatpush3.bf16.msra.mxu1 (%p239_p11), %v1323_v14 }
 0x234   :  { %1206 = vmatprep.subr.bf16.mxu1 (%p239_p11), %v1399_v10 }
 0x237   :  { %1207 = vmatpush3.bf16.msra.mxu1 (%p239_p11), %v1325_v16 }
 0x238   :  { %1208 = vmatprep.subr.bf16.mxu1 (%p239_p11), %v1399_v10 }
 0x23b   :  { %1209 = vmatpush3.bf16.msra.mxu1 (%p239_p11), %v1327_v18 }
 0x23c   :  { %1210 = vmatprep.subr.bf16.mxu1 (%p239_p11), %v1399_v10 }
 0x23f   :  { %1211 = vmatpush3.bf16.msra.mxu1 (%p239_p11), %v1329_v22 }
 0x240   :  { %1212 = vmatprep.subr.bf16.mxu1 (%p239_p11), %v1399_v10 }
 0x243   :  { %1213 = vmatpush3.bf16.msra.mxu1 (%p239_p11), %v1331_v24 }
 0x244   :  { %1214 = vmatprep.subr.bf16.mxu1 (%p239_p11), %v1399_v10 }
 0x247   :  { %1215 = vmatpush3.bf16.msra.mxu1 (%p239_p11), %v1333_v26 }
 0x248   :  { %1240 = vmatprep.subr.bf16.mxu1 (%p239_p11), %v1399_v10 }
 0x2fd   : > { %v1190_v2 = vpop.f32.mrb[0].mxu1 }
 0x2fe   : > { %v421_v3 = vadd.f32 %v1190_v2, %v1618_v29  ;;  %v404_v4 = vpop.f32.mrb[1].mxu1  ;;  %v721_v2 = vld [vmem:[%s1835_s5] sm:$0xf] (%p239_p11) }
 0x2ff   : > { %v419_v5 = vadd.f32 %v404_v4, %v1621_v31  ;;  %v1191_v6 = vpop.f32.mrb[2].mxu1  ;;  %241 = sbr.rel (!%p239_p11) target bundleno = 286 (0x11e), region = 124  ;;  %v1343_v4 = vld [vmem:[%s1843_s13] sm:$0xff] (%p239_p11)  }
 0x300   : > { %v425_v7 = vmax.f32 %v421_v3, 0.0  ;;  %v422_v8 = vadd.f32 %v1191_v6, %v1624_v33  ;;  %v407_v9 = vpop.f32.mrb[3].mxu1  ;;  %v1342_v3 = vld [vmem:[%s1841_s11 + $0x38] sm:$0xff] (%p239_p11)   ;;  %v1345_v6 = vld [vmem:[%s1843_s13 + $0x10] sm:$0xff] (%p239_p11)  }
 0x301   : > { %v423_v30 = vmax.f32 %v419_v5, 0.0  ;;  %v420_v32 = vadd.f32 %v407_v9, %v1627_v35  ;;  %v1344_v5 = vld [vmem:[%s1843_s13 + $0x8] sm:$0xff] (%p239_p11)  }
 0x302   : > { %429 = vst [vmem:[#allocation2 + $0x10] sm:$0xff] %v425_v7  ;;  %v426_v34 = vmax.f32 %v422_v8, 0.0  ;;  %v1346_v7 = vld [vmem:[%s1843_s13 + $0x18] sm:$0xff] (%p239_p11)   ;;  %v1347_v8 = vld [vmem:[%s1843_s13 + $0x20] sm:$0xff] (%p239_p11)   ;;  %v1348_v9 = vld [vmem:[%s1843_s13 + $0x28] sm:$0xff] (%p239_p11)  }
 0x303   : > { %427 = vst [vmem:[#allocation2] sm:$0xff] %v423_v30  ;;  %v424_v36 = vmax.f32 %v420_v32, 0.0 }
 0x304   : > { %430 = vst [vmem:[#allocation2 + $0x18] sm:$0xff] %v426_v34 }
 0x305   : > { %428 = vst [vmem:[#allocation2 + $0x8] sm:$0xff] %v424_v36 }
 0x309   :  { %v433_v39 = vld [vmem:[#allocation2 + $0x10] sm:$0xff] }
 0x30a   :  { %v431_v37 = vld [vmem:[#allocation2] sm:$0xff] }
 0x30b   :  { %v434_v41 = vld [vmem:[#allocation2 + $0x18] sm:$0xff] }
 0x30c   :  { %v432_v38 = vld [vmem:[#allocation2 + $0x8] sm:$0xff]  ;;  %v436_v42 = vpack.c.bf16 %v434_v41, %v433_v39  ;;  %v1350_v39 = vld [vmem:[%s1843_s13 + $0x38] sm:$0xff]  }
 0x30d   :  { %v435_v40 = vpack.c.bf16 %v432_v38, %v431_v37  ;;  %v1349_v38 = vld [vmem:[%s1843_s13 + $0x30] sm:$0xff]  }
 0x30f   :  { %1193 = vmatpush3.bf16.msra.mxu0 %v435_v40  ;;  %v1062_v40 = vld [vmem:[%s1842_s12] ss:$0 sm:$0xff] }
 0x310   :  { %1194 = vmatprep.subr.bf16.mxu0 %v1399_v10 }
 0x313   :  { %1195 = vmatpush3.bf16.msra.mxu0 %v436_v42 }
 0x314   :  { %1220 = vmatprep.subr.bf16.mxu0 %v1399_v10 }
 0x316   :  { %1197 = vmatmul.mubr.msk.bf16.vlgmr.msra.gmra.mrb[0].mxu0 %vm254_vm1, %v1637_v44 }
 0x317   :  { %1221 = vmatpush3.bf16.msra.mxu0 %v1318_v13  ;;  %1236 = vmatprep.mubr.msk.bf16.mxu0 %vm1402_vm2, %v1399_v10 }
 0x318   :  { %1222 = vmatprep.subr.bf16.mxu0 %v1399_v10 }
 0x31b   :  { %1223 = vmatpush3.bf16.msra.mxu0 %v1320_v15 }
 0x31c   :  { %1224 = vmatprep.subr.bf16.mxu0 %v1399_v10 }
 0x31f   :  { %1225 = vmatpush3.bf16.msra.mxu0 %v1322_v17 }
 0x320   :  { %1226 = vmatprep.subr.bf16.mxu0 %v1399_v10 }
 0x323   :  { %1227 = vmatpush3.bf16.msra.mxu0 %v1324_v19 }
 0x324   :  { %1228 = vmatprep.subr.bf16.mxu0 %v1399_v10 }
 0x327   :  { %1229 = vmatpush3.bf16.msra.mxu0 %v1326_v20 }
 0x328   :  { %1230 = vmatprep.subr.bf16.mxu0 %v1399_v10 }
 0x32b   :  { %1231 = vmatpush3.bf16.msra.mxu0 %v1328_v21 }
 0x32c   :  { %1232 = vmatprep.subr.bf16.mxu0 %v1399_v10 }
 0x32f   :  { %1233 = vmatpush3.bf16.msra.mxu0 %v1330_v23 }
 0x330   :  { %1234 = vmatprep.subr.bf16.mxu0 %v1399_v10 }
 0x333   :  { %1235 = vmatpush3.bf16.msra.mxu0 %v1332_v25 }
 0x334   :  { %1246 = vmatprep.subr.bf16.mxu0 %v1399_v10 }
 0x336   :  { %1237 = vmatmul.mubr.bf16.vlgmr.msra.gmra.mrb[4].mxu0 %v1334_v27 }
 0x337   :  { %1262 = vmatprep.mubr.msk.bf16.mxu0 %vm1402_vm2, %v1399_v10  ;;  %1247 = vmatpush3.bf16.msra.mxu0 %v1335_v47 }
 0x338   :  { %1248 = vmatprep.subr.bf16.mxu0 %v1399_v10 }
 0x33b   :  { %1249 = vmatpush3.bf16.msra.mxu0 %v1336_v48 }
 0x33c   :  { %1250 = vmatprep.subr.bf16.mxu0 %v1399_v10 }
 0x33f   :  { %1251 = vmatpush3.bf16.msra.mxu0 %v1337_v49 }
 0x340   :  { %1252 = vmatprep.subr.bf16.mxu0 %v1399_v10 }
 0x343   :  { %1253 = vmatpush3.bf16.msra.mxu0 %v1338_v50 }
 0x344   :  { %1254 = vmatprep.subr.bf16.mxu0 %v1399_v10 }
 0x347   :  { %1255 = vmatpush3.bf16.msra.mxu0 %v1339_v51 }
 0x348   :  { %1256 = vmatprep.subr.bf16.mxu0 %v1399_v10 }
 0x34b   :  { %1257 = vmatpush3.bf16.msra.mxu0 %v1340_v52 }
 0x34c   :  { %1258 = vmatprep.subr.bf16.mxu0 %v1399_v10 }
 0x34f   :  { %1259 = vmatpush3.bf16.msra.mxu0 %v1341_v53 }
 0x350   :  { %1260 = vmatprep.subr.bf16.mxu0 %v1399_v10 }
 0x353   :  { %1261 = vmatpush3.bf16.msra.mxu0 %v1342_v3 }
 0x3e9   :  { %v480_v28 = vpop.f32.mrb[0].mxu0 }
 0x3ea   :  { %487 = vst [vmem:[#allocation3] sm:$0xff] %v480_v28  ;;  %v1198_v29 = vpop.f32.mrb[1].mxu0 }
 0x3eb   :  { %v483_v31 = vpop.f32.mrb[2].mxu0 }
 0x3ec   :  { %488 = vst [vmem:[#allocation3 + $0x8] sm:$0xff] %v483_v31  ;;  %v1199_v33 = vpop.f32.mrb[3].mxu0  ;;  %v509_v35 = vpack.c.bf16 %v483_v31, %v480_v28 }
 0x3ee   :  { %1217 = vmatmul.mubr.bf16.vlgmr.msra.gmra.mrb[0].mxu1 %v509_v35 }
 0x3ef   :  { %1242 = vmatprep.mubr.msk.bf16.mxu1 %vm1402_vm2, %v1399_v10 }
 0x409   :  { %v703_v43 = vpop.f32.mrb[4].mxu0 }
 0x40a   :  { %v1238_v44 = vpop.f32.mrb[5].mxu0 }
 0x40b   :  { %v706_v45 = vpop.f32.mrb[6].mxu0 }
 0x40c   :  { %v1239_v46 = vpop.f32.mrb[7].mxu0 }
 0x4c1   :  { %v608_v54 = vpop.f32.mrb[0].mxu1 }
 0x4c2   :  { %v704_v56 = vadd.f32 %v703_v43, %v608_v54  ;;  %v1218_v57 = vpop.f32.mrb[1].mxu1 }
 0x4c3   :  { %v611_v58 = vpop.f32.mrb[2].mxu1 }
 0x4c4   :  { %v717_v59 = vadd.f32 %v1060_v55, %v704_v56  ;;  %v707_v60 = vadd.f32 %v706_v45, %v611_v58  ;;  %v1219_v61 = vpop.f32.mrb[3].mxu1 }
 0x4c6   :  { %v718_v62 = vadd.f32 %v1060_v55, %v707_v60  ;;  %v719_v63 = vmax.f32 %v717_v59, 0.0 }
 0x4c8   :  { %v720_v0 = vmax.f32 %v718_v62, 0.0 }
 0x4ca   :  { %v722_v1 = vpack.c.bf16 %v720_v0, %v719_v63 }
 0x4cc   :  { %1241 = vmatpush3.bf16.msra.mxu1 %v722_v1 }
 0x4cd   :  { %1266 = vmatprep.subr.bf16.mxu1 %v1399_v10 }
 0x4cf   :  { %1243 = vmatmul.mubr.msk.bf16.vlgmr.msra.gmra.mrb[4].mxu1 %vm723_vm3, %v721_v2 }
 0x4d0   :  { %1282 = vmatprep.mubr.msk.bf16.mxu1 %vm1402_vm2, %v1399_v10  ;;  %1267 = vmatpush3.bf16.msra.mxu1 %v1343_v4 }
 0x4d1   :  { %1268 = vmatprep.subr.bf16.mxu1 %v1399_v10 }
 0x4d4   :  { %1269 = vmatpush3.bf16.msra.mxu1 %v1344_v5 }
 0x4d5   :  { %1270 = vmatprep.subr.bf16.mxu1 %v1399_v10 }
 0x4d8   :  { %1271 = vmatpush3.bf16.msra.mxu1 %v1345_v6 }
 0x4d9   :  { %1272 = vmatprep.subr.bf16.mxu1 %v1399_v10 }
 0x4dc   :  { %1273 = vmatpush3.bf16.msra.mxu1 %v1346_v7 }
 0x4dd   :  { %1274 = vmatprep.subr.bf16.mxu1 %v1399_v10 }
 0x4e0   :  { %1275 = vmatpush3.bf16.msra.mxu1 %v1347_v8 }
 0x4e1   :  { %1276 = vmatprep.subr.bf16.mxu1 %v1399_v10 }
 0x4e4   :  { %1277 = vmatpush3.bf16.msra.mxu1 %v1348_v9 }
 0x4e5   :  { %1278 = vmatprep.subr.bf16.mxu1 %v1399_v10 }
 0x4e8   :  { %1279 = vmatpush3.bf16.msra.mxu1 %v1349_v38 }
 0x4e9   :  { %1280 = vmatprep.subr.bf16.mxu1 %v1399_v10  ;;  %v1071_v10 = vld [vmem:[%s1844_s14] ss:$0 sm:$0xff] }
 0x4ec   :  { %1281 = vmatpush3.bf16.msra.mxu1 %v1350_v39 }
 0x5a2   :  { %v761_v30 = vpop.f32.mrb[4].mxu1 }
 0x5a3   :  { %767 = vst [vmem:[%s1846_s16] sm:$0xff] %v761_v30  ;;  %v768_v32 = vpack.c.bf16 %v761_v30, %v761_v30  ;;  %v1244_v34 = vpop.f32.mrb[5].mxu1 }
 0x5a4   :  { %v764_v36 = vpop.f32.mrb[6].mxu1 }
 0x5a5   :  { %v1245_v37 = vpop.f32.mrb[7].mxu1  ;;  %1263 = vmatmul.mubr.bf16.vlgmr.msra.gmra.mrb[8].mxu0 %v768_v32 }
 0x678   :  { %v874_v41 = vpop.f32.mrb[8].mxu0 }
 0x679   :  { %v875_v42 = vadd.f32 %v1062_v40, %v874_v41  ;;  %v1264_v11 = vpop.f32.mrb[9].mxu0 }
 0x67a   :  { %v877_v12 = vpop.f32.mrb[10].mxu0 }
 0x67b   :  { %v880_v13 = vmax.f32 %v875_v42, 0.0  ;;  %v1265_v14 = vpop.f32.mrb[11].mxu0 }
 0x67d   :  { %v881_v15 = vpack.c.bf16 %v880_v13, %v880_v13 }
 0x67f   :  { %1283 = vmatmul.mubr.bf16.vlgmr.msra.gmra.mrb[8].mxu1 %v881_v15 }
 0x752   :  { %v987_v16 = vpop.f32.mrb[8].mxu1 }
 0x753   :  { %v988_v17 = vadd.f32 %v1071_v10, %v987_v16  ;;  %v1284_v18 = vpop.f32.mrb[9].mxu1 }
 0x754   :  { %v990_v19 = vpop.f32.mrb[10].mxu1 }
 0x755   :  { %v993_v20 = vmul.f32 0.5, %v988_v17  ;;  %v1285_v21 = vpop.f32.mrb[11].mxu1 }
 0x757   :  { %1351 = vtanh.f32 %v993_v20 }
 0x761   :  { %v1352_v22 = vpop.eup %1351 }
 0x762   :  { %v995_v23 = vadd.f32 1.0, %v1352_v22 }
 0x764   :  { %v996_v24 = vmul.f32 0.5, %v995_v23 }
 0x766   :  { %997 = vst [vmem:[%s1845_s15] sm:$0xff] %v996_v24 }
 0x767   :  { %1006 = vsyncpa [#allocation6], 1 }
 0x768   :  { %1007 = vsyncpa [#allocation8], 1 }

</bundles_post_ra>
